<compile_context>
chip_gen: v5e
topology: v5e:2x2
jax: 0.10.0
libtpu: 0.0.40
codegen_flags: <defaults>
</compile_context>

<pallas_src>
import jax
import jax.numpy as jnp
from jax.experimental import pallas as pl
from jax.experimental.pallas import tpu as pltpu

# ----------------------------- configuration -----------------------------
THRESHOLD = 0.9                      # module default
EPS = 1e-8                           # F.cosine_similarity default eps
PATCH = 8                            # synthetic "ViT" patch size
C, H, W = 3, 16, 16                  # small image, NCHW
P = (H // PATCH) * (W // PATCH)      # patches per image = 4
DP = C * PATCH * PATCH               # raw patch dim     = 192
DPP = 256                            # padded patch dim (whole number of 128-lane vregs)
DE = 128                             # embed dim
DF = 128                             # feature dim
OUT_LANES = 128                      # lane-dense output slab width
TB = 16                              # pairs per grid step -> MXU LHS rows = TB*2P = 128


# --------------------------- fused Pallas kernel ---------------------------
def fused_reward_kernel(thr_ref, patches_ref, w_embed_ref, w_head_ref, out_ref):
    """Backbone + cosine similarity + reward for TB validator/miner pairs per grid step.

    thr_ref    : (1,)            f32 SMEM  -- threshold (scalar prefetch, no recompile)
    patches_ref: (TB*2P, DPP)    f32       -- pair p rows [p*2P : p*2P+P] validator, next P miner
    w_embed_ref: (DPP, DE)       f32       -- VMEM-resident across grid steps
    w_head_ref : (DE, DF)        f32       -- VMEM-resident across grid steps
    out_ref    : (TB, 128)       f32       -- lane 0 = sim, lane 1 = reward, rest 0
    """
    thr = thr_ref[0]
    rows_per_blk = TB * 2 * P

    # ---- synthetic backbone: (128, 256)@(256, 128) embed, tanh, (128, 128)@(128, 128) head ----
    emb = jnp.tanh(jnp.dot(patches_ref[...], w_embed_ref[...],
                           preferred_element_type=jnp.float32))          # (TB*2P, DE) f32
    feats = jnp.dot(emb, w_head_ref[...],
                    preferred_element_type=jnp.float32)                  # (TB*2P, DF) f32

    # ---- mean-pool over patches via one constant pool-matrix MXU matmul ----
    # pool row i < TB  -> validator of pair i (cols [i*2P, i*2P+P))
    # pool row i >= TB -> miner     of pair i-TB (cols [(i-TB)*2P+P, (i-TB)*2P+2P))
    r = jax.lax.broadcasted_iota(jnp.int32, (2 * TB, rows_per_blk), 0)
    c = jax.lax.broadcasted_iota(jnp.int32, (2 * TB, rows_per_blk), 1)
    pair = jnp.where(r < TB, r, r - TB)
    start = pair * (2 * P) + jnp.where(r < TB, 0, P)
    pool = jnp.where((c >= start) & (c < start + P),
                     jnp.float32(1.0 / P), jnp.float32(0.0))             # (2TB, TB*2P)
    pooled = jnp.dot(pool, feats, preferred_element_type=jnp.float32)    # (2TB, DF) f32

    v = pooled[:TB, :]                                                   # validators (TB, DF)
    m = pooled[TB:, :]                                                   # miners     (TB, DF)

    # ---- F.cosine_similarity(dim=1, eps): x1.x2 / (max(||x1||,eps)*max(||x2||,eps)) ----
    dot = jnp.sum(v * m, axis=-1, keepdims=True)                         # (TB, 1)
    na2 = jnp.sum(v * v, axis=-1, keepdims=True)
    nb2 = jnp.sum(m * m, axis=-1, keepdims=True)
    eps2 = jnp.float32(EPS * EPS)
    # max(sqrt(x), eps) == sqrt(max(x, eps^2)); rsqrt rides the EUP slot.
    inv_denom = jax.lax.rsqrt(jnp.maximum(na2, eps2) * jnp.maximum(nb2, eps2))
    sim = dot * inv_denom                                                # (TB, 1)

    # ---- reward mapping (strict > as in the PyTorch reference) ----
    reward = jnp.where(sim > thr,
                       jnp.float32(1.0),
                       jnp.where(sim > 0.4,
                                 (sim + (1.0 - thr)) ** 3,
                                 jnp.float32(0.0)))                      # (TB, 1)

    # ---- lane-dense output: one unmasked (TB, 128) store ----
    lanes = jax.lax.broadcasted_iota(jnp.int32, (TB, OUT_LANES), 1)
    out_ref[...] = jnp.where(lanes == 0, sim,
                             jnp.where(lanes == 1, reward, jnp.float32(0.0)))


# ------------------------------ wrappers ----------------------------------
def patchify_batch(imgs):
    """(B, C, H, W) NCHW -> (B, P, DP) float32.  Pure JAX glue, runs under the same jit."""
    b, c, h, w = imgs.shape
    x = imgs.reshape(b, c, h // PATCH, PATCH, w // PATCH, PATCH)
    x = jnp.transpose(x, (0, 2, 4, 1, 3, 5))                            # (B, h/p, w/p, C, p, p)
    return x.reshape(b, (h // PATCH) * (w // PATCH), c * PATCH * PATCH).astype(jnp.float32)


def cosine_similarity_reward_batch(validator_imgs, miner_imgs, w_embed_padded, w_head, thr):
    """Batched forward: B backbones x2 + cosine similarity + reward in ONE pallas_call.

    validator_imgs, miner_imgs : (B, C, H, W) f32
    w_embed_padded             : (DPP, DE) f32   (zero-padded rows DP:DPP, hoisted to init)
    w_head                     : (DE, DF)  f32
    thr                        : (1,) f32  (runtime threshold; no recompile on change)
    returns (sims (B,), rewards (B,))
    """
    b = validator_imgs.shape[0]
    assert b % TB == 0, "batch must be a multiple of TB"

    # Patchify + pair-stack + zero-pad K to 256; all fused into this jit'd program.
    pv = patchify_batch(validator_imgs)                                  # (B, P, DP)
    pm = patchify_batch(miner_imgs)                                      # (B, P, DP)
    both = jnp.concatenate([pv, pm], axis=1)                             # (B, 2P, DP)
    both = jnp.pad(both, ((0, 0), (0, 0), (0, DPP - DP)))                # (B, 2P, DPP)
    patches = both.reshape(b * 2 * P, DPP)                               # (B*2P, DPP)

    grid_spec = pltpu.PrefetchScalarGridSpec(
        num_scalar_prefetch=1,                       # threshold -> SMEM, passed to index_maps
        grid=(b // TB,),
        in_specs=[
            pl.BlockSpec((TB * 2 * P, DPP), lambda i, thr_ref: (i, 0)),  # streamed per step
            pl.BlockSpec((DPP, DE), lambda i, thr_ref: (0, 0)),          # VMEM-resident weights
            pl.BlockSpec((DE, DF), lambda i, thr_ref: (0, 0)),           # VMEM-resident weights
        ],
        out_specs=pl.BlockSpec((TB, OUT_LANES), lambda i, thr_ref: (i, 0)),
    )

    out = pl.pallas_call(
        fused_reward_kernel,
        out_shape=jax.ShapeDtypeStruct((b, OUT_LANES), jnp.float32),
        grid_spec=grid_spec,
        compiler_params=pltpu.CompilerParams(
            dimension_semantics=("parallel",),       # batch axis -> both TCs on v7x
        ),
    )(thr, patches, w_embed_padded, w_head)

    return out[:, 0], out[:, 1]


def reference(validator_imgs, miner_imgs, w_embed, w_head, threshold):
    """Pure-JAX f32 reference for the fused kernel (pool-then-head order, as in the module)."""
    def features(imgs):
        pt = patchify_batch(imgs)                                        # (B, P, DP)
        emb = jnp.tanh(jnp.einsum("bpd,de->bpe", pt, w_embed))
        return jnp.einsum("be,ef->bf", emb.mean(axis=1), w_head)
    a = features(validator_imgs)
    bfeat = features(miner_imgs)
    num = jnp.sum(a * bfeat, axis=-1)
    den = (jnp.maximum(jnp.sqrt(jnp.sum(a * a, -1)), EPS)
           * jnp.maximum(jnp.sqrt(jnp.sum(bfeat * bfeat, -1)), EPS))
    sim = num / den
    rew = jnp.where(sim > threshold, 1.0,
                    jnp.where(sim > 0.4, (sim + (1.0 - threshold)) ** 3, 0.0))
    return sim, rew


# ------------------------------- main --------------------------------------
if __name__ == "__main__":
    B = 32                                            # 2 grid steps of TB=16 pairs
    key = jax.random.PRNGKey(0)
    k_img, k_noise, k_alt, k_we, k_wh = jax.random.split(key, 5)

    # Deterministic synthetic "images" (already transformed/normalized), NCHW.
    validator_imgs = jax.random.uniform(k_img, (B, C, H, W), dtype=jnp.float32)
    # First half of miners: small perturbation (high sim). Second half: unrelated (low sim).
    perturbed = validator_imgs + 0.05 * jax.random.normal(k_noise, (B, C, H, W), jnp.float32)
    unrelated = jax.random.uniform(k_alt, (B, C, H, W), dtype=jnp.float32)
    half_mask = (jnp.arange(B) < B // 2).reshape(B, 1, 1, 1)
    miner_imgs = jnp.where(half_mask, perturbed, unrelated)

    # Deterministic synthetic backbone weights (hoisted: padded / prepared ONCE at init).
    # TODO(synk): real module uses a pretrained ViT-B/16 CLIP backbone (timm) + its transforms;
    # these synthetic projections play the same role (image -> feature vector). The real backbone
    # would be a weight-streaming pipeline sized for v7x's 64 MiB VMEM, not VMEM-resident weights.
    w_embed = jax.random.normal(k_we, (DP, DE), dtype=jnp.float32) / jnp.sqrt(DP)
    w_head = jax.random.normal(k_wh, (DE, DF), dtype=jnp.float32) / jnp.sqrt(DE)
    w_embed_padded = jnp.pad(w_embed, ((0, DPP - DP), (0, 0)))            # (DPP, DE), once

    thr = jnp.array([THRESHOLD], dtype=jnp.float32)

    forward = jax.jit(cosine_similarity_reward_batch)
    sims, rewards = forward(validator_imgs, miner_imgs, w_embed_padded, w_head, thr)
    sims, rewards = jax.block_until_ready((sims, rewards))

    ref_sims, ref_rewards = reference(validator_imgs, miner_imgs, w_embed, w_head, THRESHOLD)
    assert jnp.all(jnp.isfinite(sims)) and jnp.all(jnp.isfinite(rewards))
    assert jnp.allclose(sims, ref_sims, atol=5e-3), (
        f"sim mismatch: max err {float(jnp.max(jnp.abs(sims - ref_sims)))}")

    print(f"Sim[0]: {float(sims[0]):.4f} -> reward: {float(rewards[0]):.4f} | "
          f"Sim[-1]: {float(sims[-1]):.4f} -> reward: {float(rewards[-1]):.4f}")
    print("KERNEL_OK")
</pallas_src>

<mosaic_0001>
module attributes {stable_mosaic.version = 11 : i64} {
  func.func @fused_reward_kernel(%arg0: i32, %arg1: memref<1xf32, #tpu.memory_space<smem>>, %arg2: memref<128x256xf32, #tpu.memory_space<vmem>>, %arg3: memref<256x128xf32, #tpu.memory_space<vmem>>, %arg4: memref<128x128xf32, #tpu.memory_space<vmem>>, %arg5: memref<16x128xf32, #tpu.memory_space<vmem>>) attributes {dimension_semantics = [#tpu.dimension_semantics<parallel>], iteration_bounds = array<i64: 2>, scalar_prefetch = 1 : i64, scratch_operands = 0 : i64, tpu.core_type = #tpu.core_type<tc>, window_params = [{transform_indices = @transform_0, window_bounds = array<i64: 128, 256>}, {pipeline_mode = #tpu.pipeline_mode<synchronous>, transform_indices = @transform_1, window_bounds = array<i64: 256, 128>}, {pipeline_mode = #tpu.pipeline_mode<synchronous>, transform_indices = @transform_2, window_bounds = array<i64: 128, 128>}, {transform_indices = @transform_3, window_bounds = array<i64: 16, 128>}]} {
    %c0 = arith.constant 0 : index
    %0 = memref.load %arg1[%c0] : memref<1xf32, #tpu.memory_space<smem>>
    %c0_0 = arith.constant 0 : index
    %c0_1 = arith.constant 0 : index
    %1 = vector.load %arg2[%c0_0, %c0_1] : memref<128x256xf32, #tpu.memory_space<vmem>>, vector<128x256xf32>
    %c0_2 = arith.constant 0 : index
    %c0_3 = arith.constant 0 : index
    %2 = vector.load %arg3[%c0_2, %c0_3] : memref<256x128xf32, #tpu.memory_space<vmem>>, vector<256x128xf32>
    %cst = arith.constant dense<0.000000e+00> : vector<128x128xf32>
    %3 = tpu.matmul %1, %2, %cst {dimension_numbers = #tpu.dot_dimension_numbers<[1], [0], [0], [1], [0, 0, 1, 1], [], []>} : vector<128x256xf32>, vector<256x128xf32>, vector<128x128xf32> -> vector<128x128xf32>
    %4 = math.tanh %3 : vector<128x128xf32>
    %c0_4 = arith.constant 0 : index
    %c0_5 = arith.constant 0 : index
    %5 = vector.load %arg4[%c0_4, %c0_5] : memref<128x128xf32, #tpu.memory_space<vmem>>, vector<128x128xf32>
    %cst_6 = arith.constant dense<0.000000e+00> : vector<128x128xf32>
    %6 = tpu.matmul %4, %5, %cst_6 {dimension_numbers = #tpu.dot_dimension_numbers<[1], [0], [0], [1], [0, 0, 1, 1], [], []>} : vector<128x128xf32>, vector<128x128xf32>, vector<128x128xf32> -> vector<128x128xf32>
    %7 = tpu.iota {dimensions = array<i32: 0>} : vector<32x128xi32>
    %8 = tpu.iota {dimensions = array<i32: 1>} : vector<32x128xi32>
    %c16_i32 = arith.constant 16 : i32
    %9 = vector.broadcast %c16_i32 : i32 to vector<32x128xi32>
    %10 = arith.cmpi slt, %7, %9 : vector<32x128xi32>
    %c16_i32_7 = arith.constant 16 : i32
    %11 = vector.broadcast %c16_i32_7 : i32 to vector<32x128xi32>
    %12 = arith.subi %7, %11 : vector<32x128xi32>
    %13 = arith.select %10, %7, %12 : vector<32x128xi1>, vector<32x128xi32>
    %c8_i32 = arith.constant 8 : i32
    %14 = vector.broadcast %c8_i32 : i32 to vector<32x128xi32>
    %15 = arith.muli %13, %14 : vector<32x128xi32>
    %c16_i32_8 = arith.constant 16 : i32
    %16 = vector.broadcast %c16_i32_8 : i32 to vector<32x128xi32>
    %17 = arith.cmpi slt, %7, %16 : vector<32x128xi32>
    %c0_i32 = arith.constant 0 : i32
    %c4_i32 = arith.constant 4 : i32
    %18 = vector.broadcast %c0_i32 : i32 to vector<32x128xi32>
    %19 = vector.broadcast %c4_i32 : i32 to vector<32x128xi32>
    %20 = arith.select %17, %18, %19 : vector<32x128xi1>, vector<32x128xi32>
    %21 = arith.addi %15, %20 : vector<32x128xi32>
    %22 = arith.cmpi sge, %8, %21 : vector<32x128xi32>
    %c4_i32_9 = arith.constant 4 : i32
    %23 = vector.broadcast %c4_i32_9 : i32 to vector<32x128xi32>
    %24 = arith.addi %21, %23 : vector<32x128xi32>
    %25 = arith.cmpi slt, %8, %24 : vector<32x128xi32>
    %26 = arith.andi %22, %25 : vector<32x128xi1>
    %cst_10 = arith.constant 2.500000e-01 : f32
    %cst_11 = arith.constant 0.000000e+00 : f32
    %27 = vector.broadcast %cst_10 : f32 to vector<32x128xf32>
    %28 = vector.broadcast %cst_11 : f32 to vector<32x128xf32>
    %29 = arith.select %26, %27, %28 : vector<32x128xi1>, vector<32x128xf32>
    %cst_12 = arith.constant dense<0.000000e+00> : vector<32x128xf32>
    %30 = tpu.matmul %29, %6, %cst_12 {dimension_numbers = #tpu.dot_dimension_numbers<[1], [0], [0], [1], [0, 0, 1, 1], [], []>} : vector<32x128xf32>, vector<128x128xf32>, vector<32x128xf32> -> vector<32x128xf32>
    %31 = vector.extract_strided_slice %30 {offsets = [0, 0], sizes = [16, 128], strides = [1, 1]} : vector<32x128xf32> to vector<16x128xf32>
    %32 = vector.extract_strided_slice %30 {offsets = [16, 0], sizes = [16, 128], strides = [1, 1]} : vector<32x128xf32> to vector<16x128xf32>
    %33 = arith.mulf %31, %32 : vector<16x128xf32>
    %cst_13 = arith.constant dense<0.000000e+00> : vector<16xf32>
    %34 = vector.multi_reduction <add>, %33, %cst_13 [1] : vector<16x128xf32> to vector<16xf32>
    %35 = vector.shape_cast %34 : vector<16xf32> to vector<16x1xf32>
    %36 = arith.mulf %31, %31 : vector<16x128xf32>
    %cst_14 = arith.constant dense<0.000000e+00> : vector<16xf32>
    %37 = vector.multi_reduction <add>, %36, %cst_14 [1] : vector<16x128xf32> to vector<16xf32>
    %38 = vector.shape_cast %37 : vector<16xf32> to vector<16x1xf32>
    %39 = arith.mulf %32, %32 : vector<16x128xf32>
    %cst_15 = arith.constant dense<0.000000e+00> : vector<16xf32>
    %40 = vector.multi_reduction <add>, %39, %cst_15 [1] : vector<16x128xf32> to vector<16xf32>
    %41 = vector.shape_cast %40 : vector<16xf32> to vector<16x1xf32>
    %cst_16 = arith.constant 1.000000e-16 : f32
    %42 = vector.broadcast %cst_16 : f32 to vector<16x1xf32>
    %43 = arith.maximumf %38, %42 : vector<16x1xf32>
    %cst_17 = arith.constant 1.000000e-16 : f32
    %44 = vector.broadcast %cst_17 : f32 to vector<16x1xf32>
    %45 = arith.maximumf %41, %44 : vector<16x1xf32>
    %46 = arith.mulf %43, %45 : vector<16x1xf32>
    %47 = math.rsqrt %46 : vector<16x1xf32>
    %48 = arith.mulf %35, %47 : vector<16x1xf32>
    %49 = vector.broadcast %0 : f32 to vector<16x1xf32>
    %50 = arith.cmpf ogt, %48, %49 : vector<16x1xf32>
    %cst_18 = arith.constant 4.000000e-01 : f32
    %51 = vector.broadcast %cst_18 : f32 to vector<16x1xf32>
    %52 = arith.cmpf ogt, %48, %51 : vector<16x1xf32>
    %cst_19 = arith.constant 1.000000e+00 : f32
    %53 = arith.subf %cst_19, %0 : f32
    %54 = vector.broadcast %53 : f32 to vector<16x1xf32>
    %55 = arith.addf %48, %54 : vector<16x1xf32>
    %56 = arith.mulf %55, %55 : vector<16x1xf32>
    %57 = arith.mulf %55, %56 : vector<16x1xf32>
    %cst_20 = arith.constant 0.000000e+00 : f32
    %58 = vector.broadcast %cst_20 : f32 to vector<16x1xf32>
    %59 = arith.select %52, %57, %58 : vector<16x1xi1>, vector<16x1xf32>
    %cst_21 = arith.constant 1.000000e+00 : f32
    %60 = vector.broadcast %cst_21 : f32 to vector<16x1xf32>
    %61 = arith.select %50, %60, %59 : vector<16x1xi1>, vector<16x1xf32>
    %62 = tpu.iota {dimensions = array<i32: 1>} : vector<16x128xi32>
    %c0_i32_22 = arith.constant 0 : i32
    %63 = vector.broadcast %c0_i32_22 : i32 to vector<16x128xi32>
    %64 = arith.cmpi eq, %62, %63 : vector<16x128xi32>
    %c1_i32 = arith.constant 1 : i32
    %65 = vector.broadcast %c1_i32 : i32 to vector<16x128xi32>
    %66 = arith.cmpi eq, %62, %65 : vector<16x128xi32>
    %cst_23 = arith.constant 0.000000e+00 : f32
    %67 = vector.shape_cast %61 : vector<16x1xf32> to vector<16x1xf32>
    %68 = vector.broadcast %67 : vector<16x1xf32> to vector<16x128xf32>
    %69 = vector.broadcast %cst_23 : f32 to vector<16x128xf32>
    %70 = arith.select %66, %68, %69 : vector<16x128xi1>, vector<16x128xf32>
    %71 = vector.shape_cast %48 : vector<16x1xf32> to vector<16x1xf32>
    %72 = vector.broadcast %71 : vector<16x1xf32> to vector<16x128xf32>
    %73 = arith.select %64, %72, %70 : vector<16x128xi1>, vector<16x128xf32>
    %c0_24 = arith.constant 0 : index
    %c0_25 = arith.constant 0 : index
    %74 = vector.load %arg5[%c0_24, %c0_25] : memref<16x128xf32, #tpu.memory_space<vmem>>, vector<16x128xf32>
    tpu.vector_store %arg5[%c0_24, %c0_25], %73 {strides = array<i32>} : memref<16x128xf32, #tpu.memory_space<vmem>>, vector<16x128xf32>,
    return
  }
  func.func @transform_0(%arg0: i32, %arg1: memref<1xf32, #tpu.memory_space<smem>>) -> (i32, i32) {
    %c0_i32 = arith.constant 0 : i32
    %c0_i32_0 = arith.constant 0 : i32
    return %arg0, %c0_i32 : i32, i32
  }
  func.func @transform_1(%arg0: i32, %arg1: memref<1xf32, #tpu.memory_space<smem>>) -> (i32, i32) {
    %c0_i32 = arith.constant 0 : i32
    %c0_i32_0 = arith.constant 0 : i32
    %c0_i32_1 = arith.constant 0 : i32
    return %c0_i32, %c0_i32_0 : i32, i32
  }
  func.func @transform_2(%arg0: i32, %arg1: memref<1xf32, #tpu.memory_space<smem>>) -> (i32, i32) {
    %c0_i32 = arith.constant 0 : i32
    %c0_i32_0 = arith.constant 0 : i32
    %c0_i32_1 = arith.constant 0 : i32
    return %c0_i32, %c0_i32_0 : i32, i32
  }
  func.func @transform_3(%arg0: i32, %arg1: memref<1xf32, #tpu.memory_space<smem>>) -> (i32, i32) {
    %c0_i32 = arith.constant 0 : i32
    %c0_i32_0 = arith.constant 0 : i32
    return %arg0, %c0_i32 : i32, i32
  }
}

</mosaic_0001>

<bundles_post_ra>
// kernel: cosine_similarity_reward_batch.1
= control target key start
LH: loop header
LB: loop body
LE: loop exit
PB: predicated region body
PF: predicated region fallthrough
CT: control target
= control target key end

     0   :  { %s779_s17 = smov 0   ;;  %s1002_s0 = inlined_call_operand.<no memory space> [shape: f32[1], index: 0, kind: input, shape index: {}]   ;;  %s1003_s1 = inlined_call_operand.vmem [shape: f32[256,256], index: 1, kind: input, shape index: {}]   ;;  %s1004_s2 = inlined_call_operand.vmem [shape: f32[256,128], index: 2, kind: input, shape index: {}]   ;;  %s1005_s3 = inlined_call_operand.vmem [shape: f32[128,128], index: 3, kind: input, shape index: {}]   ;;  %s1006_s4 = inlined_call_operand.vmem [shape: f32[32,128], index: 4, kind: output, shape index: {}]  }
   0x1   :  { %9 = sst [smem:[#allocation3]] %s1002_s0 }
   0x2 LB: > { %s677_s18 = sadd.s32 4294967295, %s748_s17   ;;  %p681_p0 = scmp.ge.s32.totalorder %s748_s17, 1  ;;  %s748_s17 = sphi %s779_s17, %s15_s17  }
   0x3   : > { %p141_p1 = scmp.lt.s32.totalorder %s748_s17, 3 }
   0x5   : > { %p142_p2 = pnand %p681_p0, %p141_p1 }
   0x6   : > { %s682_s25 = sshll.u32 (!%p142_p2), %s677_s18, 4  ;;  %s685_s0 = sshll.u32 (!%p142_p2), %s677_s18, 1 }
   0x7   : > { %145 = sbr.rel (%p142_p2) target bundleno = 772 (0x304), region = 32  ;;  %p167_p3 = scmp.lt.s32.totalorder (!%p142_p2), %s682_s25, 31 }
   0x8   : > { %p174_p4 = scmp.lt.s32.totalorder (!%p142_p2), %s685_s0, 3 }
   0xc   : > { %v227_v0 = vld [vmem:[%s1004_s2 + $0x78] sm:$0xff]  ;;  %v226_v2 = vld [vmem:[%s1004_s2 + $0x70] sm:$0xff]  ;;  %v225_v4 = vld [vmem:[%s1004_s2 + $0x68] sm:$0xff]  ;;  %s1008_s25 = smov (!%p167_p3, %s682_s25), 31  ;;  %s1010_s0 = smov (!%p174_p4, %s685_s0), 3 }
   0xd   : > { %v243_v1 = vld [vmem:[%s1004_s2 + $0xf8] sm:$0xff]  ;;  %244 = vmatpush.msra.mxu0 %v227_v0  ;;  %v242_v3 = vld [vmem:[%s1004_s2 + $0xf0] sm:$0xff]  ;;  %v241_v5 = vld [vmem:[%s1004_s2 + $0xe8] sm:$0xff]  ;;  %s696_s21 = sshll.u32 %s1008_s25, 4  ;;  %s686_s18 = sshll.u32 %s1010_s0, 3 }
   0xe   : > { %309 = vmatpush.msra.mxu1 %v243_v1  ;;  %v224_v6 = vld [vmem:[%s1004_s2 + $0x60] sm:$0xff]  ;;  %v223_v8 = vld [vmem:[%s1004_s2 + $0x58] sm:$0xff]  ;;  %v222_v10 = vld [vmem:[%s1004_s2 + $0x50] sm:$0xff]  ;;  %s882_s6 = scalar_lea.vmem %s1003_s1, %s696_s21  ;;  %s177_s24 = scalar_lea.vmem %s1006_s4, %s686_s18 }
   0xf   : > { %245 = vmatpush.msra.mxu0 %v226_v2  ;;  %v240_v7 = vld [vmem:[%s1004_s2 + $0xe0] sm:$0xff]  ;;  %v239_v9 = vld [vmem:[%s1004_s2 + $0xd8] sm:$0xff]  ;;  %v238_v11 = vld [vmem:[%s1004_s2 + $0xd0] sm:$0xff] }
  0x10   : > { %310 = vmatpush.msra.mxu1 %v242_v3  ;;  %v221_v12 = vld [vmem:[%s1004_s2 + $0x48] sm:$0xff]  ;;  %v220_v14 = vld [vmem:[%s1004_s2 + $0x40] sm:$0xff]  ;;  %v219_v16 = vld [vmem:[%s1004_s2 + $0x38] sm:$0xff] }
  0x11   : > { %246 = vmatpush.msra.mxu0 %v225_v4  ;;  %v237_v13 = vld [vmem:[%s1004_s2 + $0xc8] sm:$0xff]  ;;  %v236_v15 = vld [vmem:[%s1004_s2 + $0xc0] sm:$0xff]  ;;  %v235_v17 = vld [vmem:[%s1004_s2 + $0xb8] sm:$0xff] }
  0x12   : > { %311 = vmatpush.msra.mxu1 %v241_v5  ;;  %v218_v18 = vld [vmem:[%s1004_s2 + $0x30] sm:$0xff]  ;;  %v217_v20 = vld [vmem:[%s1004_s2 + $0x28] sm:$0xff]  ;;  %v216_v22 = vld [vmem:[%s1004_s2 + $0x20] sm:$0xff] }
  0x13   : > { %247 = vmatpush.msra.mxu0 %v224_v6  ;;  %v234_v19 = vld [vmem:[%s1004_s2 + $0xb0] sm:$0xff]  ;;  %v233_v21 = vld [vmem:[%s1004_s2 + $0xa8] sm:$0xff]  ;;  %v232_v23 = vld [vmem:[%s1004_s2 + $0xa0] sm:$0xff] }
  0x14   : > { %312 = vmatpush.msra.mxu1 %v240_v7  ;;  %v215_v24 = vld [vmem:[%s1004_s2 + $0x18] sm:$0xff]  ;;  %v214_v26 = vld [vmem:[%s1004_s2 + $0x10] sm:$0xff]  ;;  %v213_v28 = vld [vmem:[%s1004_s2 + $0x8] sm:$0xff] }
  0x15   : > { %248 = vmatpush.msra.mxu0 %v223_v8  ;;  %v231_v25 = vld [vmem:[%s1004_s2 + $0x98] sm:$0xff]  ;;  %v230_v27 = vld [vmem:[%s1004_s2 + $0x90] sm:$0xff]  ;;  %v229_v29 = vld [vmem:[%s1004_s2 + $0x88] sm:$0xff] }
  0x16   : > { %313 = vmatpush.msra.mxu1 %v239_v9  ;;  %v212_v30 = vld [vmem:[%s1004_s2] sm:$0xff]  ;;  %v181_v33 = vld [vmem:[%s882_s6 + $0x8] sm:$0xff]  ;;  %v182_v34 = vld [vmem:[%s882_s6 + $0x10] sm:$0xff] }
  0x17   : > { %249 = vmatpush.msra.mxu0 %v222_v10  ;;  %v228_v31 = vld [vmem:[%s1004_s2 + $0x80] sm:$0xff]  ;;  %v183_v35 = vld [vmem:[%s882_s6 + $0x18] sm:$0xff]  ;;  %v185_v37 = vld [vmem:[%s882_s6 + $0x28] sm:$0xff] }
  0x18   : > { %314 = vmatpush.msra.mxu1 %v238_v11  ;;  %v180_v32 = vld [vmem:[%s882_s6] sm:$0xff]  ;;  %v186_v38 = vld [vmem:[%s882_s6 + $0x30] sm:$0xff]  ;;  %v187_v39 = vld [vmem:[%s882_s6 + $0x38] sm:$0xff] }
  0x19   : > { %250 = vmatpush.msra.mxu0 %v221_v12  ;;  %v184_v36 = vld [vmem:[%s882_s6 + $0x20] sm:$0xff]  ;;  %v189_v41 = vld [vmem:[%s882_s6 + $0x48] sm:$0xff]  ;;  %v190_v42 = vld [vmem:[%s882_s6 + $0x50] sm:$0xff] }
  0x1a   : > { %315 = vmatpush.msra.mxu1 %v237_v13  ;;  %v188_v40 = vld [vmem:[%s882_s6 + $0x40] sm:$0xff]  ;;  %v191_v43 = vld [vmem:[%s882_s6 + $0x58] sm:$0xff]  ;;  %v193_v45 = vld [vmem:[%s882_s6 + $0x68] sm:$0xff] }
  0x1b   : > { %251 = vmatpush.msra.mxu0 %v220_v14  ;;  %v192_v44 = vld [vmem:[%s882_s6 + $0x60] sm:$0xff]  ;;  %v194_v46 = vld [vmem:[%s882_s6 + $0x70] sm:$0xff]  ;;  %v195_v47 = vld [vmem:[%s882_s6 + $0x78] sm:$0xff] }
  0x1c   : > { %316 = vmatpush.msra.mxu1 %v236_v15  ;;  %v196_v48 = vld [vmem:[%s882_s6 + $0x80] sm:$0xff]  ;;  %v197_v49 = vld [vmem:[%s882_s6 + $0x88] sm:$0xff]  ;;  %v198_v50 = vld [vmem:[%s882_s6 + $0x90] sm:$0xff] }
  0x1d   : > { %252 = vmatpush.msra.mxu0 %v219_v16  ;;  %v199_v51 = vld [vmem:[%s882_s6 + $0x98] sm:$0xff]  ;;  %v404_v53 = vld [vmem:[%s1005_s3 + $0x70] sm:$0xff]  ;;  %v403_v54 = vld [vmem:[%s1005_s3 + $0x68] sm:$0xff] }
  0x1e   : > { %317 = vmatpush.msra.mxu1 %v235_v17  ;;  %v405_v52 = vld [vmem:[%s1005_s3 + $0x78] sm:$0xff]  ;;  %v402_v55 = vld [vmem:[%s1005_s3 + $0x60] sm:$0xff]  ;;  %v201_v57 = vld [vmem:[%s882_s6 + $0xa8] sm:$0xff] }
  0x1f   : > { %253 = vmatpush.msra.mxu0 %v218_v18  ;;  %406 = vmatpush.msra.mxu2 %v405_v52  ;;  %v200_v56 = vld [vmem:[%s882_s6 + $0xa0] sm:$0xff]  ;;  %v401_v58 = vld [vmem:[%s1005_s3 + $0x58] sm:$0xff]  ;;  %v400_v59 = vld [vmem:[%s1005_s3 + $0x50] sm:$0xff] }
  0x20   : > { %318 = vmatpush.msra.mxu1 %v234_v19  ;;  %v399_v60 = vld [vmem:[%s1005_s3 + $0x48] sm:$0xff]  ;;  %v398_v61 = vld [vmem:[%s1005_s3 + $0x40] sm:$0xff]  ;;  %v202_v62 = vld [vmem:[%s882_s6 + $0xb0] sm:$0xff] }
  0x21   : > { %254 = vmatpush.msra.mxu0 %v217_v20  ;;  %407 = vmatpush.msra.mxu2 %v404_v53  ;;  %v203_v63 = vld [vmem:[%s882_s6 + $0xb8] sm:$0xff]  ;;  %v396_v1 = vld [vmem:[%s1005_s3 + $0x30] sm:$0xff]  ;;  %v395_v2 = vld [vmem:[%s1005_s3 + $0x28] sm:$0xff] }
  0x22   : > { %319 = vmatpush.msra.mxu1 %v233_v21  ;;  %v397_v0 = vld [vmem:[%s1005_s3 + $0x38] sm:$0xff]  ;;  %v204_v3 = vld [vmem:[%s882_s6 + $0xc0] sm:$0xff]  ;;  %v205_v4 = vld [vmem:[%s882_s6 + $0xc8] sm:$0xff] }
  0x23   : > { %255 = vmatpush.msra.mxu0 %v216_v22  ;;  %408 = vmatpush.msra.mxu2 %v403_v54  ;;  %v394_v5 = vld [vmem:[%s1005_s3 + $0x20] sm:$0xff]  ;;  %v393_v6 = vld [vmem:[%s1005_s3 + $0x18] sm:$0xff]  ;;  %v392_v7 = vld [vmem:[%s1005_s3 + $0x10] sm:$0xff] }
  0x24   : > { %320 = vmatpush.msra.mxu1 %v232_v23  ;;  %v391_v8 = vld [vmem:[%s1005_s3 + $0x8] sm:$0xff]  ;;  %v206_v9 = vld [vmem:[%s882_s6 + $0xd0] sm:$0xff]  ;;  %v207_v10 = vld [vmem:[%s882_s6 + $0xd8] sm:$0xff] }
  0x25   : > { %256 = vmatpush.msra.mxu0 %v215_v24  ;;  %409 = vmatpush.msra.mxu2 %v402_v55  ;;  %v390_v11 = vld [vmem:[%s1005_s3] sm:$0xff]  ;;  %v209_v13 = vld [vmem:[%s882_s6 + $0xe8] sm:$0xff]  ;;  %v210_v14 = vld [vmem:[%s882_s6 + $0xf0] sm:$0xff] }
  0x26   : > { %321 = vmatpush.msra.mxu1 %v231_v25  ;;  %v208_v12 = vld [vmem:[%s882_s6 + $0xe0] sm:$0xff]  ;;  %v211_v15 = vld [vmem:[%s882_s6 + $0xf8] sm:$0xff]  ;;  %s980_s6 = sld [smem:[#allocation3]] }
  0x27   : > { %257 = vmatpush.msra.mxu0 %v214_v26  ;;  %410 = vmatpush.msra.mxu2 %v401_v58 }
  0x28   : > { %322 = vmatpush.msra.mxu1 %v230_v27 }
  0x29   : > { %258 = vmatpush.msra.mxu0 %v213_v28  ;;  %411 = vmatpush.msra.mxu2 %v400_v59 }
  0x2a   : > { %323 = vmatpush.msra.mxu1 %v229_v29 }
  0x2b   : > { %259 = vmatpush.msra.mxu0 %v212_v30  ;;  %412 = vmatpush.msra.mxu2 %v399_v60 }
  0x2c   : > { %324 = vmatpush.msra.mxu1 %v228_v31  ;;  %260 = vmatmul.f32.vlgmr.msra.gmra.mxu0 %v180_v32  ;;  %s601_s21 = ssub.f32 1.0, %s980_s6 }
  0x2d   : > { %325 = vmatmul.f32.vlgmr.msra.gmra.mxu1 %v181_v33  ;;  %413 = vmatpush.msra.mxu2 %v398_v61 }
  0x2f   : > { %414 = vmatpush.msra.mxu2 %v397_v0 }
  0x31   : > { %415 = vmatpush.msra.mxu2 %v396_v1 }
  0x33   : > { %416 = vmatpush.msra.mxu2 %v395_v2 }
  0x34   : > { %263 = vmatmul.f32.gmra.mxu0 %v182_v34 }
  0x35   : > { %328 = vmatmul.f32.gmra.mxu1 %v183_v35  ;;  %417 = vmatpush.msra.mxu2 %v394_v5 }
  0x37   : > { %418 = vmatpush.msra.mxu2 %v393_v6 }
  0x39   : > { %419 = vmatpush.msra.mxu2 %v392_v7 }
  0x3b   : > { %420 = vmatpush.msra.mxu2 %v391_v8 }
  0x3c   : > { %266 = vmatmul.f32.gmra.mxu0 %v184_v36 }
  0x3d   : > { %331 = vmatmul.f32.gmra.mxu1 %v185_v37  ;;  %421 = vmatpush.msra.mxu2 %v390_v11 }
  0x44   : > { %269 = vmatmul.f32.gmra.mxu0 %v186_v38 }
  0x45   : > { %334 = vmatmul.f32.gmra.mxu1 %v187_v39 }
  0x4c   : > { %272 = vmatmul.f32.gmra.mxu0 %v188_v40 }
  0x4d   : > { %337 = vmatmul.f32.gmra.mxu1 %v189_v41 }
  0x54   : > { %275 = vmatmul.f32.gmra.mxu0 %v190_v42 }
  0x55   : > { %340 = vmatmul.f32.gmra.mxu1 %v191_v43 }
  0x5c   : > { %278 = vmatmul.f32.gmra.mxu0 %v192_v44 }
  0x5d   : > { %343 = vmatmul.f32.gmra.mxu1 %v193_v45 }
  0x64   : > { %281 = vmatmul.f32.gmra.mxu0 %v194_v46 }
  0x65   : > { %346 = vmatmul.f32.gmra.mxu1 %v195_v47 }
  0x6c   : > { %284 = vmatmul.f32.gmra.mxu0 %v196_v48 }
  0x6d   : > { %349 = vmatmul.f32.gmra.mxu1 %v197_v49 }
  0x74   : > { %287 = vmatmul.f32.gmra.mxu0 %v198_v50 }
  0x75   : > { %352 = vmatmul.f32.gmra.mxu1 %v199_v51 }
  0x7c   : > { %290 = vmatmul.f32.gmra.mxu0 %v200_v56 }
  0x7d   : > { %355 = vmatmul.f32.gmra.mxu1 %v201_v57 }
  0x84   : > { %293 = vmatmul.f32.gmra.mxu0 %v202_v62 }
  0x85   : > { %358 = vmatmul.f32.gmra.mxu1 %v203_v63 }
  0x8c   : > { %296 = vmatmul.f32.gmra.mxu0 %v204_v3 }
  0x8d   : > { %361 = vmatmul.f32.gmra.mxu1 %v205_v4 }
  0x94   : > { %299 = vmatmul.f32.gmra.mxu0 %v206_v9 }
  0x95   : > { %364 = vmatmul.f32.gmra.mxu1 %v207_v10 }
  0x9c   : > { %302 = vmatmul.f32.gmra.mxu0 %v208_v12 }
  0x9d   : > { %367 = vmatmul.f32.gmra.mxu1 %v209_v13 }
  0xa4   : > { %305 = vmatmul.f32.gmra.mxu0 %v210_v14 }
  0xa5   : > { %370 = vmatmul.f32.gmra.mxu1 %v211_v15 }
  0xa9   : > { %v261_v16 = vpop.f32.mrf.mxu0 }
  0xaa   : > { %v326_v17 = vpop.f32.mrf.mxu1 }
  0xab   : > { %v327_v18 = vadd.f32 %v326_v17, %v261_v16 }
  0xad   : > { %706 = vtanh.f32 %v327_v18 }
  0xb1   : > { %v264_v19 = vpop.f32.mrf.mxu0 }
  0xb2   : > { %v329_v20 = vpop.f32.mrf.mxu1 }
  0xb3   : > { %v707_v21 = vpop.eup %706  ;;  %v330_v22 = vadd.f32 %v329_v20, %v264_v19 }
  0xb4   : > { %422 = vmatmul.f32.vlgmr.msra.gmra.mxu2 %v707_v21 }
  0xb5   : > { %708 = vtanh.f32 %v330_v22 }
  0xb9   : > { %v267_v23 = vpop.f32.mrf.mxu0 }
  0xba   : > { %v332_v24 = vpop.f32.mrf.mxu1 }
  0xbb   : > { %v709_v25 = vpop.eup %708  ;;  %v333_v26 = vadd.f32 %v332_v24, %v267_v23 }
  0xbc   : > { %425 = vmatmul.f32.gmra.mxu2 %v709_v25 }
  0xbd   : > { %710 = vtanh.f32 %v333_v26 }
  0xc1   : > { %v270_v27 = vpop.f32.mrf.mxu0 }
  0xc2   : > { %v335_v28 = vpop.f32.mrf.mxu1 }
  0xc3   : > { %v711_v29 = vpop.eup %710  ;;  %v336_v30 = vadd.f32 %v335_v28, %v270_v27 }
  0xc4   : > { %428 = vmatmul.f32.gmra.mxu2 %v711_v29 }
  0xc5   : > { %712 = vtanh.f32 %v336_v30 }
  0xc9   : > { %v273_v31 = vpop.f32.mrf.mxu0 }
  0xca   : > { %v338_v32 = vpop.f32.mrf.mxu1 }
  0xcb   : > { %v713_v33 = vpop.eup %712  ;;  %v339_v34 = vadd.f32 %v338_v32, %v273_v31  ;;  %v471_v32 = vlaneseq }
  0xcc   : > { %431 = vmatmul.f32.gmra.mxu2 %v713_v33 }
  0xcd   : > { %714 = vtanh.f32 %v339_v34  ;;  %v472_v33 = vshrl.u32 %v471_v32, 7 }
  0xcf   : > { %v489_v34 = vmul.u32 8, %v472_v33 }
  0xd1   : > { %v276_v35 = vpop.f32.mrf.mxu0 }
  0xd2   : > { %v341_v36 = vpop.f32.mrf.mxu1 }
  0xd3   : > { %v715_v37 = vpop.eup %714  ;;  %v342_v38 = vadd.f32 %v341_v36, %v276_v35  ;;  %v970_v35 = vand.u32 127, %v471_v32  ;;  %v499_v36 = vadd.s32 4, %v489_v34 }
  0xd4   : > { %434 = vmatmul.f32.gmra.mxu2 %v715_v37  ;;  %v473_v37 = vadd.s32 8, %v472_v33 }
  0xd5   : > { %716 = vtanh.f32 %v342_v38  ;;  %vm501_vm0 = vcmp.ge.s32.totalorder %v970_v35, %v489_v34  ;;  %vm509_vm1 = vcmp.lt.s32.totalorder %v970_v35, %v499_v36  ;;  %vm503_vm6 = vcmp.ge.s32.totalorder %v970_v35, %v499_v36 }
  0xd6   : > { %v490_v38 = vmul.u32 8, %v473_v37  ;;  %vm513_vm2 = vmand %vm501_vm0, %vm509_vm1 }
  0xd8   : > { %vm502_vm3 = vcmp.ge.s32.totalorder %v970_v35, %v490_v38 }
  0xd9   : > { %v279_v39 = vpop.f32.mrf.mxu0 }
  0xda   : > { %v344_v40 = vpop.f32.mrf.mxu1 }
  0xdb   : > { %v717_v41 = vpop.eup %716  ;;  %v345_v42 = vadd.f32 %v344_v40, %v279_v39  ;;  %v506_v39 = vadd.s32 4, %v490_v38  ;;  %v475_v40 = vadd.s32 24, %v472_v33 }
  0xdc   : > { %437 = vmatmul.f32.gmra.mxu2 %v717_v41  ;;  %v750_v41 = vmov 0.25  }
  0xdd   : > { %718 = vtanh.f32 %v345_v42  ;;  %vm510_vm4 = vcmp.lt.s32.totalorder %v970_v35, %v506_v39  ;;  %v689_v42 = vadd.s32 4294967280, %v475_v40 }
  0xde   : > { %vm514_vm5 = vmand %vm502_vm3, %vm510_vm4  ;;  %vm613_vm4 = vcmp.eq.s32.totalorder %v970_v35, 0 }
  0xe1   : > { %v282_v43 = vpop.f32.mrf.mxu0 }
  0xe2   : > { %v347_v44 = vpop.f32.mrf.mxu1 }
  0xe3   : > { %v719_v45 = vpop.eup %718  ;;  %v348_v46 = vadd.f32 %v347_v44, %v282_v43  ;;  %v507_v43 = vadd.s32 4, %v499_v36  ;;  %v492_v44 = vmul.u32 8, %v689_v42 }
  0xe4   : > { %440 = vmatmul.f32.gmra.mxu2 %v719_v45 }
  0xe5   : > { %720 = vtanh.f32 %v348_v46  ;;  %vm511_vm7 = vcmp.lt.s32.totalorder %v970_v35, %v507_v43  ;;  %v500_v45 = vadd.s32 4, %v492_v44 }
  0xe6   : > { %vm515_vm8 = vmand %vm503_vm6, %vm511_vm7 }
  0xe7   : > { %v508_v46 = vadd.s32 4, %v500_v45  ;;  %vm504_vm9 = vcmp.ge.s32.totalorder %v970_v35, %v500_v45 }
  0xe9   : > { %v285_v47 = vpop.f32.mrf.mxu0  ;;  %vm512_vm10 = vcmp.lt.s32.totalorder %v970_v35, %v508_v46 }
  0xea   : > { %v350_v48 = vpop.f32.mrf.mxu1  ;;  %vm516_vm11 = vmand %vm504_vm9, %vm512_vm10 }
  0xeb   : > { %v721_v49 = vpop.eup %720  ;;  %v351_v50 = vadd.f32 %v350_v48, %v285_v47 }
  0xec   : > { %443 = vmatmul.f32.gmra.mxu2 %v721_v49 }
  0xed   : > { %722 = vtanh.f32 %v351_v50 }
  0xf1   : > { %v288_v51 = vpop.f32.mrf.mxu0 }
  0xf2   : > { %v353_v52 = vpop.f32.mrf.mxu1 }
  0xf3   : > { %v723_v53 = vpop.eup %722  ;;  %v354_v54 = vadd.f32 %v353_v52, %v288_v51 }
  0xf4   : > { %446 = vmatmul.f32.gmra.mxu2 %v723_v53 }
  0xf5   : > { %724 = vtanh.f32 %v354_v54 }
  0xf9   : > { %v291_v55 = vpop.f32.mrf.mxu0 }
  0xfa   : > { %v356_v56 = vpop.f32.mrf.mxu1 }
  0xfb   : > { %v725_v57 = vpop.eup %724  ;;  %v357_v58 = vadd.f32 %v356_v56, %v291_v55 }
  0xfc   : > { %449 = vmatmul.f32.gmra.mxu2 %v725_v57 }
  0xfd   : > { %726 = vtanh.f32 %v357_v58 }
 0x101   : > { %v294_v59 = vpop.f32.mrf.mxu0 }
 0x102   : > { %v359_v60 = vpop.f32.mrf.mxu1 }
 0x103   : > { %v727_v61 = vpop.eup %726  ;;  %v360_v62 = vadd.f32 %v359_v60, %v294_v59 }
 0x104   : > { %452 = vmatmul.f32.gmra.mxu2 %v727_v61 }
 0x105   : > { %728 = vtanh.f32 %v360_v62 }
 0x109   : > { %v297_v63 = vpop.f32.mrf.mxu0 }
 0x10a   : > { %v362_v0 = vpop.f32.mrf.mxu1 }
 0x10b   : > { %v729_v1 = vpop.eup %728  ;;  %v363_v2 = vadd.f32 %v362_v0, %v297_v63 }
 0x10c   : > { %455 = vmatmul.f32.gmra.mxu2 %v729_v1 }
 0x10d   : > { %730 = vtanh.f32 %v363_v2 }
 0x111   : > { %v300_v3 = vpop.f32.mrf.mxu0 }
 0x112   : > { %v365_v4 = vpop.f32.mrf.mxu1 }
 0x113   : > { %v731_v5 = vpop.eup %730  ;;  %v366_v6 = vadd.f32 %v365_v4, %v300_v3 }
 0x114   : > { %458 = vmatmul.f32.gmra.mxu2 %v731_v5 }
 0x115   : > { %732 = vtanh.f32 %v366_v6 }
 0x119   : > { %v303_v7 = vpop.f32.mrf.mxu0 }
 0x11a   : > { %v368_v8 = vpop.f32.mrf.mxu1 }
 0x11b   : > { %v733_v9 = vpop.eup %732  ;;  %v369_v10 = vadd.f32 %v368_v8, %v303_v7 }
 0x11c   : > { %461 = vmatmul.f32.gmra.mxu2 %v733_v9 }
 0x11d   : > { %734 = vtanh.f32 %v369_v10 }
 0x121   : > { %v306_v11 = vpop.f32.mrf.mxu0 }
 0x122   : > { %v371_v12 = vpop.f32.mrf.mxu1 }
 0x123   : > { %v735_v13 = vpop.eup %734  ;;  %v372_v14 = vadd.f32 %v371_v12, %v306_v11 }
 0x124   : > { %464 = vmatmul.f32.gmra.mxu2 %v735_v13  ;;  %v602_v13 = vstv %s601_s21 }
 0x125   : > { %736 = vtanh.f32 %v372_v14 }
 0x12b   : > { %v737_v15 = vpop.eup %736 }
 0x12c   : > { %467 = vmatmul.f32.gmra.mxu2 %v737_v15 }
 0x137   : > { %v423_v16 = vpop.f32.mrf.mxu2 }
 0x13f   : > { %v426_v17 = vpop.f32.mrf.mxu2 }
 0x147   : > { %v429_v18 = vpop.f32.mrf.mxu2 }
 0x14f   : > { %v432_v19 = vpop.f32.mrf.mxu2 }
 0x157   : > { %v435_v20 = vpop.f32.mrf.mxu2 }
 0x15f   : > { %v438_v21 = vpop.f32.mrf.mxu2 }
 0x167   : > { %v441_v22 = vpop.f32.mrf.mxu2 }
 0x16f   : > { %v444_v23 = vpop.f32.mrf.mxu2 }
 0x177   : > { %v447_v24 = vpop.f32.mrf.mxu2 }
 0x17f   : > { %v450_v25 = vpop.f32.mrf.mxu2 }
 0x187   : > { %v453_v26 = vpop.f32.mrf.mxu2 }
 0x18f   : > { %v456_v27 = vpop.f32.mrf.mxu2 }
 0x197   : > { %v459_v28 = vpop.f32.mrf.mxu2 }
 0x19f   : > { %v462_v29 = vpop.f32.mrf.mxu2 }
 0x1a7   : > { %v465_v30 = vpop.f32.mrf.mxu2 }
 0x1af   : > { %v468_v31 = vpop.f32.mrf.mxu2 }
 0x1b0   : > { %521 = vmatpush.msra.mxu3 %v468_v31 }
 0x1b2   : > { %522 = vmatpush.msra.mxu3 %v465_v30 }
 0x1b4   : > { %523 = vmatpush.msra.mxu3 %v462_v29 }
 0x1b6   : > { %524 = vmatpush.msra.mxu3 %v459_v28 }
 0x1b8   : > { %525 = vmatpush.msra.mxu3 %v456_v27 }
 0x1ba   : > { %526 = vmatpush.msra.mxu3 %v453_v26 }
 0x1bc   : > { %527 = vmatpush.msra.mxu3 %v450_v25 }
 0x1be   : > { %528 = vmatpush.msra.mxu3 %v447_v24 }
 0x1c0   : > { %529 = vmatpush.msra.mxu3 %v444_v23 }
 0x1c2   : > { %530 = vmatpush.msra.mxu3 %v441_v22 }
 0x1c4   : > { %531 = vmatpush.msra.mxu3 %v438_v21 }
 0x1c6   : > { %532 = vmatpush.msra.mxu3 %v435_v20  ;;  %v596_v20 = vstv %s980_s6 }
 0x1c8   : > { %533 = vmatpush.msra.mxu3 %v432_v19 }
 0x1ca   : > { %534 = vmatpush.msra.mxu3 %v429_v18 }
 0x1cc   : > { %535 = vmatpush.msra.mxu3 %v426_v17 }
 0x1ce   : > { %536 = vmatpush.msra.mxu3 %v423_v16 }
 0x1cf   : > { %690 = vmatmul.msk.f32.vlgmr.msra.gmra.mxu3 %vm513_vm2, %v750_v41  ;;  %vm614_vm2 = vcmp.eq.s32.totalorder %v970_v35, 1 }
 0x1d7   : > { %691 = vmatmul.msk.f32.gmra.mxu3 %vm514_vm5, %v750_v41 }
 0x1df   : > { %692 = vmatmul.msk.f32.gmra.mxu3 %vm515_vm8, %v750_v41 }
 0x1e7   : > { %693 = vmatmul.msk.f32.gmra.mxu3 %vm516_vm11, %v750_v41 }
 0x252   : > { %v538_v47 = vpop.f32.mrf.mxu3 }
 0x253   : > { %v556_v48 = vmul.f32 %v538_v47, %v538_v47 }
 0x255   : > { %558 = vadd.xlane.f32.xlu0 %v556_v48 }
 0x25a   : > { %v541_v49 = vpop.f32.mrf.mxu3 }
 0x25b   : > { %v557_v50 = vmul.f32 %v541_v49, %v541_v49 }
 0x25d   : > { %560 = vadd.xlane.f32.xlu1 %v557_v50 }
 0x262   : > { %v544_v51 = vpop.f32.mrf.mxu3 }
 0x263   : > { %v562_v52 = vmul.f32 %v544_v51, %v544_v51  ;;  %v550_v53 = vmul.f32 %v544_v51, %v538_v47 }
 0x265   : > { %564 = vadd.xlane.f32.xlu0 %v562_v52  ;;  %552 = vadd.xlane.f32.xlu2 %v550_v53 }
 0x26a   : > { %v547_v54 = vpop.f32.mrf.mxu3 }
 0x26b   : > { %v551_v55 = vmul.f32 %v547_v54, %v541_v49  ;;  %v563_v56 = vmul.f32 %v547_v54, %v547_v54 }
 0x26d   : > { %566 = vadd.xlane.f32.xlu1 %v563_v56  ;;  %554 = vadd.xlane.f32.xlu2 %v551_v55 }
 0x2c8   : > { %v559_v57 = vpop.xlane.xlu0 %558 }
 0x2c9   : > { %v568_v60 = vmax.f32 %v559_v57, 1e-16 }
 0x2d0   : > { %v561_v58 = vpop.xlane.xlu1 %560 }
 0x2d1   : > { %v569_v0 = vmax.f32 %v561_v58, 1e-16 }
 0x2d8   : > { %v565_v59 = vpop.xlane.xlu0 %564  ;;  %v553_v10 = vpop.xlane.xlu2 %552 }
 0x2d9   : > { %v570_v61 = vmax.f32 %v565_v59, 1e-16 }
 0x2db   : > { %v572_v62 = vmul.f32 %v570_v61, %v568_v60 }
 0x2dd   : > { %738 = vrsqrt.f32 %v572_v62  ;;  %vm580_vm13 = vweird.f32 %v572_v62 }
 0x2e0   : > { %v567_v63 = vpop.xlane.xlu1 %566  ;;  %v555_v24 = vpop.xlane.xlu2 %554 }
 0x2e1   : > { %v571_v1 = vmax.f32 %v567_v63, 1e-16 }
 0x2e3   : > { %v739_v2 = vpop.eup %738  ;;  %v573_v3 = vmul.f32 %v571_v1, %v569_v0 }
 0x2e4   : > { %v575_v4 = vmul.f32 %v739_v2, %v572_v62  ;;  %vm581_vm12 = vweird.f32 %v739_v2 }
 0x2e5   : > { %740 = vrsqrt.f32 %v573_v3  ;;  %vm582_vm14 = vmor %vm580_vm13, %vm581_vm12  ;;  %vm590_vm0 = vweird.f32 %v573_v3 }
 0x2e6   : > { %v576_v5 = vmul.f32 %v739_v2, %v575_v4 }
 0x2e8   : > { %v577_v6 = vmul.f32 0.5, %v576_v5 }
 0x2ea   : > { %v578_v7 = vsub.f32 1.5, %v577_v6 }
 0x2eb   : > { %v741_v8 = vpop.eup %740 }
 0x2ec   : > { %v579_v9 = vmul.f32 %v739_v2, %v578_v7  ;;  %v585_v11 = vmul.f32 %v741_v8, %v573_v3  ;;  %vm591_vm15 = vweird.f32 %v741_v8 }
 0x2ed   : > { %vm592_vm1 = vmor %vm590_vm0, %vm591_vm15 }
 0x2ee   : > { %v583_v12 = vsel %vm582_vm14, %v739_v2, %v579_v9  ;;  %v586_v14 = vmul.f32 %v741_v8, %v585_v11 }
 0x2ef   : > { %v594_v15 = vmul.f32 %v583_v12, %v553_v10 }
 0x2f0   : > { %v587_v16 = vmul.f32 0.5, %v586_v14 }
 0x2f1   : > { %v603_v17 = vadd.f32 %v602_v13, %v594_v15  ;;  %vm599_vm3 = vcmp.gt.f32.partialorder %v594_v15, 0.4  ;;  %vm597_vm5 = vcmp.gt.f32.partialorder %v594_v15, %v596_v20 }
 0x2f2   : > { %v588_v18 = vsub.f32 1.5, %v587_v16 }
 0x2f3   : > { %v605_v19 = vmul.f32 %v603_v17, %v603_v17 }
 0x2f4   : > { %v589_v21 = vmul.f32 %v741_v8, %v588_v18 }
 0x2f5   : > { %v607_v22 = vmul.f32 %v605_v19, %v603_v17 }
 0x2f6   : > { %v593_v23 = vsel %vm592_vm1, %v741_v8, %v589_v21 }
 0x2f7   : > { %v609_v25 = vsel %vm599_vm3, %v607_v22, 0.0  ;;  %v595_v26 = vmul.f32 %v593_v23, %v555_v24 }
 0x2f8   : > { %v611_v27 = vsel %vm597_vm5, 1.0, %v609_v25 }
 0x2f9   : > { %v615_v28 = vsel %vm614_vm2, %v611_v27, 0.0  ;;  %v604_v29 = vadd.f32 %v602_v13, %v595_v26  ;;  %vm600_vm6 = vcmp.gt.f32.partialorder %v595_v26, 0.4  ;;  %vm598_vm7 = vcmp.gt.f32.partialorder %v595_v26, %v596_v20 }
 0x2fa   : > { %v617_v30 = vsel %vm613_vm4, %v594_v15, %v615_v28 }
 0x2fb   : > { %619 = vst [vmem:[%s177_s24] sm:$0xff] %v617_v30  ;;  %v606_v31 = vmul.f32 %v604_v29, %v604_v29 }
 0x2fd   : > { %v608_v32 = vmul.f32 %v606_v31, %v604_v29 }
 0x2ff   : > { %v610_v33 = vsel %vm600_vm6, %v608_v32, 0.0 }
 0x300   : > { %v612_v34 = vsel %vm598_vm7, 1.0, %v610_v33 }
 0x301   : > { %v616_v36 = vsel %vm614_vm2, %v612_v34, 0.0 }
 0x302   : > { %v618_v37 = vsel %vm613_vm4, %v595_v26, %v616_v36 }
 0x303   : > { %620 = vst [vmem:[%s177_s24 + $0x8] sm:$0xff] %v618_v37 }
 0x304 PF: > { %s15_s17 = sadd.s32 1, %s748_s17  }
 0x305   : > { %p12_p5 = scmp.ge.s32.totalorder %s15_s17, 4  }
 0x307   :  { %14 = sbr.rel (!%p12_p5) target bundleno = 2 (0x2), region = 62 }

</bundles_post_ra>
